<compile_context>
chip_gen: v7x
topology: tpu7x:2x2x1
jax: 0.10.0
libtpu: 0.0.40
codegen_flags: <defaults>
</compile_context>

<pallas_src>
import math

import jax
import jax.numpy as jnp
from jax import lax
from jax.experimental import pallas as pl
from jax.experimental.pallas import tpu as pltpu


def _spec(shape, index_map, single_buffer=False):
    """BlockSpec helper: optionally single-buffer (for grid-invariant blocks)."""
    if single_buffer:
        try:
            return pl.BlockSpec(shape, index_map,
                                pipeline_mode=pl.Buffered(buffer_count=1))
        except TypeError:
            pass  # older BlockSpec signature without pipeline_mode
    return pl.BlockSpec(shape, index_map)


def _pick_kv_chunk(T):
    """Chunk size for the K/V projection loop (bounds f32 intermediates)."""
    if T <= 512:
        return T
    for c in (512, 256, 128, 64, 32, 16, 8):
        if T % c == 0:
            return c
    return T


def _attention_kernel(n_head, q_tile, kv_chunk):
    """Kernel closure with static n_head / tile sizes baked in."""

    def kernel(x_ref, wq_ref, bq_ref, wk_ref, bk_ref, wv_ref, bv_ref,
               wp_ref, bp_ref, out_ref, k_scratch, v_scratch, y_buf):
        # x_ref: (1, T, C) bf16 block — one batch element, full sequence.
        qi = pl.program_id(1)
        T = x_ref.shape[1]
        C = x_ref.shape[2]
        D = C // n_head

        # ---- K/V projection: once per batch element (qi == 0), chunked over
        # T and written straight into bf16 VMEM scratch (no big f32 temp). ----
        @pl.when(qi == 0)
        def _():
            def project_chunk(start):
                xc = x_ref[0, pl.ds(start, kv_chunk), :]             # (chunk, C) bf16
                kc = jnp.dot(xc, wk_ref[...],
                             preferred_element_type=jnp.float32) + bk_ref[...]
                vc = jnp.dot(xc, wv_ref[...],
                             preferred_element_type=jnp.float32) + bv_ref[...]
                k_scratch[pl.ds(start, kv_chunk), :] = kc.astype(jnp.bfloat16)
                v_scratch[pl.ds(start, kv_chunk), :] = vc.astype(jnp.bfloat16)

            n_chunks = T // kv_chunk
            if n_chunks == 1:
                project_chunk(0)
            else:
                def body(c, carry):
                    project_chunk(pl.multiple_of(c * kv_chunk, kv_chunk))
                    return carry
                lax.fori_loop(0, n_chunks, body, 0)

        # ---- Q projection for this query tile only. The 1/sqrt(D) softmax
        # scale is pre-folded into W_q / b_q in the wrapper. ----
        q_start = pl.multiple_of(qi * q_tile, q_tile)
        xq = x_ref[0, pl.ds(q_start, q_tile), :]                      # (Tq, C) bf16
        q = jnp.dot(xq, wq_ref[...],
                    preferred_element_type=jnp.float32) + bq_ref[...]
        q = q.astype(jnp.bfloat16)                                    # (Tq, C)

        # ---- Per-head attention. Each head reads static ref slices of the
        # K/V scratch (views, no full-array load) and terminates in a store
        # to its column slice of y_buf, bounding live ranges per head.
        # TODO(synk): a lax.fori_loop over heads needs dynamic lane-dim ref
        # slices (offset h*D); kept as a static loop for robust lowering.
        # TODO(synk): for very long sequences on v7x, a key-tiled online-softmax
        # (flash) restructure would remove the full-sequence K/V scratch.
        for h in range(n_head):
            lo, hi = h * D, (h + 1) * D
            qh = q[:, lo:hi]                                          # (Tq, D) bf16
            kh = k_scratch[:, lo:hi]                                  # (T,  D) bf16
            vh = v_scratch[:, lo:hi]                                  # (T,  D) bf16

            # q @ k^T without materializing a transpose; f32 accumulation.
            att = lax.dot_general(qh, kh, (((1,), (1,)), ((), ())),
                                  preferred_element_type=jnp.float32)
            # Softmax over keys (NO causal mask in this module's forward);
            # attn_drop / resid_drop are identity (eval mode).
            att = att - jnp.max(att, axis=-1, keepdims=True)
            p = jnp.exp(att)                                          # (Tq, T) f32
            denom = jnp.sum(p, axis=-1, keepdims=True)                # (Tq, 1) f32

            yh = jnp.dot(p.astype(jnp.bfloat16), vh,
                         preferred_element_type=jnp.float32)          # (Tq, D) f32
            yh = yh * pl.reciprocal(denom, approx=True)               # normalize small tensor
            y_buf[:, lo:hi] = yh.astype(jnp.bfloat16)

        # ---- One full-C output projection (MXU contraction K = C) and a
        # single lane-dense store. ----
        out = jnp.dot(y_buf[...], wp_ref[...],
                      preferred_element_type=jnp.float32) + bp_ref[...]
        out_ref[0] = out.astype(out_ref.dtype)

    return kernel


def causal_self_attention(x, params, n_head, q_tile=None):
    """x: (B, T, C) float32. params: dict of pre-transposed (C_in, C_out) weights."""
    B, T, C = x.shape
    assert C % n_head == 0
    D = C // n_head
    if q_tile is None:
        # 128 saturates the MXU M dim on v5e; raise to 256 on v6e/v7x when T allows.
        q_tile = T if T <= 128 else 128
    assert T % q_tile == 0
    assert q_tile == T or q_tile % 8 == 0
    kv_chunk = _pick_kv_chunk(T)

    out_dtype = x.dtype
    bf16 = jnp.bfloat16
    scale = 1.0 / math.sqrt(D)

    # Wrapper-side one-time prep: bf16 MXU weights, f32 biases, and the
    # 1/sqrt(D) scale folded into W_q / b_q.
    x_bf = x.astype(bf16)
    wq = (params["wq"] * scale).astype(bf16)
    bq = (params["bq"] * scale).astype(jnp.float32)
    wk = params["wk"].astype(bf16)
    bk = params["bk"].astype(jnp.float32)
    wv = params["wv"].astype(bf16)
    bv = params["bv"].astype(jnp.float32)
    wp = params["wp"].astype(bf16)
    bp = params["bp"].astype(jnp.float32)

    grid = (B, T // q_tile)

    # VMEM working-set estimate (single-buffered x & weights, double-buffered
    # output, scratch, live f32 intermediates) + headroom; clamped below the
    # physical VMEM of the current chip generation.
    vmem_est = (
        T * C * 2                       # x block, bf16, single buffer
        + 4 * C * C * 2                 # weights, bf16, single buffer
        + 4 * C * 4                     # biases, f32, single buffer
        + 2 * q_tile * C * 4            # output block, f32, double buffer
        + 2 * T * C * 2                 # K/V VMEM scratch, bf16
        + q_tile * C * 2                # y_buf scratch, bf16
        + 2 * kv_chunk * C * 4          # K/V projection f32 chunk intermediates
        + 3 * q_tile * T * 4            # live att / p f32 tensors
        + 2 * q_tile * C * 4            # q / out f32 intermediates
        + (4 << 20)                     # compiler scratch / spill headroom
    )
    try:
        phys_vmem = int(pltpu.get_tpu_info().vmem_capacity_bytes)
    except Exception:
        phys_vmem = 64 << 20            # conservative (v7x per-core VMEM)
    vmem_limit = int(min(max(vmem_est, 8 << 20), int(phys_vmem * 0.85)))

    x_map = lambda b, qi: (b, 0, 0)
    inv = lambda b, qi: (0, 0)

    return pl.pallas_call(
        _attention_kernel(n_head, q_tile, kv_chunk),
        out_shape=jax.ShapeDtypeStruct((B, T, C), out_dtype),
        grid_spec=pltpu.PrefetchScalarGridSpec(
            num_scalar_prefetch=0,
            grid=grid,
            in_specs=[
                _spec((1, T, C), x_map, single_buffer=True),   # x (full seq, 1 buffer)
                _spec((C, C), inv, single_buffer=True),        # W_q (pre-scaled)
                _spec((1, C), inv, single_buffer=True),        # b_q (pre-scaled)
                _spec((C, C), inv, single_buffer=True),        # W_k
                _spec((1, C), inv, single_buffer=True),        # b_k
                _spec((C, C), inv, single_buffer=True),        # W_v
                _spec((1, C), inv, single_buffer=True),        # b_v
                _spec((C, C), inv, single_buffer=True),        # W_proj
                _spec((1, C), inv, single_buffer=True),        # b_proj
            ],
            out_specs=pl.BlockSpec((1, q_tile, C), lambda b, qi: (b, qi, 0)),
            scratch_shapes=[
                pltpu.VMEM((T, C), bf16),        # cached K
                pltpu.VMEM((T, C), bf16),        # cached V
                pltpu.VMEM((q_tile, C), bf16),   # per-tile head-concat context
            ],
        ),
        compiler_params=pltpu.CompilerParams(
            dimension_semantics=("parallel", "arbitrary"),
            vmem_limit_bytes=vmem_limit,
        ),
    )(x_bf, wq, bq, wk, bk, wv, bv, wp, bp)


def init_params(key, n_embd):
    """Deterministic init mimicking nn.Linear (uniform +-1/sqrt(fan_in)).
    Weights stored transposed: (C_in, C_out) so kernel computes x @ W + b."""
    bound = 1.0 / math.sqrt(n_embd)
    keys = jax.random.split(key, 8)

    def w(k):
        return jax.random.uniform(k, (n_embd, n_embd), jnp.float32, -bound, bound)

    def b(k):
        return jax.random.uniform(k, (1, n_embd), jnp.float32, -bound, bound)

    return {
        "wq": w(keys[0]), "bq": b(keys[1]),
        "wk": w(keys[2]), "bk": b(keys[3]),
        "wv": w(keys[4]), "bv": b(keys[5]),
        "wp": w(keys[6]), "bp": b(keys[7]),
    }


def reference(x, params, n_head):
    """Pure-JAX f32 reference matching the PyTorch forward (eval mode, no mask)."""
    B, T, C = x.shape
    D = C // n_head
    q = x @ params["wq"] + params["bq"]
    k = x @ params["wk"] + params["bk"]
    v = x @ params["wv"] + params["bv"]
    q = q.reshape(B, T, n_head, D).transpose(0, 2, 1, 3)
    k = k.reshape(B, T, n_head, D).transpose(0, 2, 1, 3)
    v = v.reshape(B, T, n_head, D).transpose(0, 2, 1, 3)
    att = jnp.einsum("bhqd,bhkd->bhqk", q, k) * (1.0 / math.sqrt(D))
    att = jax.nn.softmax(att, axis=-1)
    y = jnp.einsum("bhqk,bhkd->bhqd", att, v)
    y = y.transpose(0, 2, 1, 3).reshape(B, T, C)
    return y @ params["wp"] + params["bp"]


if __name__ == "__main__":
    # Small config: B=2, T=8, n_embd=32, n_head=4 (head_dim=8)
    B, T, C, H = 2, 8, 32, 4

    key = jax.random.PRNGKey(0)
    kx, kp = jax.random.split(key)
    x = jax.random.normal(kx, (B, T, C), jnp.float32)
    params = init_params(kp, C)

    out = causal_self_attention(x, params, H)
    out = jax.block_until_ready(out)

    ref = reference(x, params, H)
    assert out.shape == (B, T, C)
    # bf16 MXU operands + approx reciprocal -> ~1e-2 level error vs the f32 reference.
    assert jnp.allclose(out, ref, atol=3e-2, rtol=3e-2), "mismatch vs reference"

    print("KERNEL_OK")
</pallas_src>

<mosaic_0001>
module attributes {stable_mosaic.version = 11 : i64} {
  func.func @kernel(%arg0: i32, %arg1: i32, %arg2: memref<1x8x32xbf16, #tpu.memory_space<vmem>>, %arg3: memref<32x32xbf16, #tpu.memory_space<vmem>>, %arg4: memref<1x32xf32, #tpu.memory_space<vmem>>, %arg5: memref<32x32xbf16, #tpu.memory_space<vmem>>, %arg6: memref<1x32xf32, #tpu.memory_space<vmem>>, %arg7: memref<32x32xbf16, #tpu.memory_space<vmem>>, %arg8: memref<1x32xf32, #tpu.memory_space<vmem>>, %arg9: memref<32x32xbf16, #tpu.memory_space<vmem>>, %arg10: memref<1x32xf32, #tpu.memory_space<vmem>>, %arg11: memref<1x8x32xf32, #tpu.memory_space<vmem>>, %arg12: memref<8x32xbf16, #tpu.memory_space<vmem>>, %arg13: memref<8x32xbf16, #tpu.memory_space<vmem>>, %arg14: memref<8x32xbf16, #tpu.memory_space<vmem>>) attributes {dimension_semantics = [#tpu.dimension_semantics<parallel>, #tpu.dimension_semantics<arbitrary>], iteration_bounds = array<i64: 2, 1>, scalar_prefetch = 0 : i64, scratch_operands = 3 : i64, tpu.core_type = #tpu.core_type<tc>, window_params = [{pipeline_mode = #tpu.pipeline_mode<synchronous>, transform_indices = @transform_0, window_bounds = array<i64: 1, 8, 32>}, {pipeline_mode = #tpu.pipeline_mode<synchronous>, transform_indices = @transform_1, window_bounds = array<i64: 32, 32>}, {pipeline_mode = #tpu.pipeline_mode<synchronous>, transform_indices = @transform_2, window_bounds = array<i64: 1, 32>}, {pipeline_mode = #tpu.pipeline_mode<synchronous>, transform_indices = @transform_3, window_bounds = array<i64: 32, 32>}, {pipeline_mode = #tpu.pipeline_mode<synchronous>, transform_indices = @transform_4, window_bounds = array<i64: 1, 32>}, {pipeline_mode = #tpu.pipeline_mode<synchronous>, transform_indices = @transform_5, window_bounds = array<i64: 32, 32>}, {pipeline_mode = #tpu.pipeline_mode<synchronous>, transform_indices = @transform_6, window_bounds = array<i64: 1, 32>}, {pipeline_mode = #tpu.pipeline_mode<synchronous>, transform_indices = @transform_7, window_bounds = array<i64: 32, 32>}, {pipeline_mode = #tpu.pipeline_mode<synchronous>, transform_indices = @transform_8, window_bounds = array<i64: 1, 32>}, {transform_indices = @transform_9, window_bounds = array<i64: 1, 8, 32>}]} {
    %c0_i32 = arith.constant 0 : i32
    %0 = arith.cmpi eq, %arg1, %c0_i32 : i32
    %1 = arith.extui %0 : i1 to i32
    %c0_i32_0 = arith.constant 0 : i32
    %2 = arith.cmpi ne, %1, %c0_i32_0 : i32
    scf.if %2 {
      %c0_53 = arith.constant 0 : index
      %c0_54 = arith.constant 0 : index
      %c0_55 = arith.constant 0 : index
      %95 = vector.load %arg2[%c0_53, %c0_54, %c0_55] : memref<1x8x32xbf16, #tpu.memory_space<vmem>>, vector<1x8x32xbf16>
      %96 = vector.shape_cast %95 : vector<1x8x32xbf16> to vector<8x32xbf16>
      %c0_56 = arith.constant 0 : index
      %c0_57 = arith.constant 0 : index
      %97 = vector.load %arg5[%c0_56, %c0_57] : memref<32x32xbf16, #tpu.memory_space<vmem>>, vector<32x32xbf16>
      %cst_58 = arith.constant dense<0.000000e+00> : vector<8x32xf32>
      %98 = tpu.matmul %96, %97, %cst_58 {dimension_numbers = #tpu.dot_dimension_numbers<[1], [0], [0], [1], [0, 0, 1, 1], [], []>} : vector<8x32xbf16>, vector<32x32xbf16>, vector<8x32xf32> -> vector<8x32xf32>
      %c0_59 = arith.constant 0 : index
      %c0_60 = arith.constant 0 : index
      %99 = vector.load %arg6[%c0_59, %c0_60] : memref<1x32xf32, #tpu.memory_space<vmem>>, vector<1x32xf32>
      %100 = vector.broadcast %99 : vector<1x32xf32> to vector<8x32xf32>
      %101 = arith.addf %98, %100 : vector<8x32xf32>
      %c0_61 = arith.constant 0 : index
      %c0_62 = arith.constant 0 : index
      %102 = vector.load %arg7[%c0_61, %c0_62] : memref<32x32xbf16, #tpu.memory_space<vmem>>, vector<32x32xbf16>
      %cst_63 = arith.constant dense<0.000000e+00> : vector<8x32xf32>
      %103 = tpu.matmul %96, %102, %cst_63 {dimension_numbers = #tpu.dot_dimension_numbers<[1], [0], [0], [1], [0, 0, 1, 1], [], []>} : vector<8x32xbf16>, vector<32x32xbf16>, vector<8x32xf32> -> vector<8x32xf32>
      %c0_64 = arith.constant 0 : index
      %c0_65 = arith.constant 0 : index
      %104 = vector.load %arg8[%c0_64, %c0_65] : memref<1x32xf32, #tpu.memory_space<vmem>>, vector<1x32xf32>
      %105 = vector.broadcast %104 : vector<1x32xf32> to vector<8x32xf32>
      %106 = arith.addf %103, %105 : vector<8x32xf32>
      %107 = arith.truncf %101 : vector<8x32xf32> to vector<8x32xbf16>
      %c0_66 = arith.constant 0 : index
      %c0_67 = arith.constant 0 : index
      %108 = vector.load %arg12[%c0_66, %c0_67] : memref<8x32xbf16, #tpu.memory_space<vmem>>, vector<8x32xbf16>
      tpu.vector_store %arg12[%c0_66, %c0_67], %107 {strides = array<i32>} : memref<8x32xbf16, #tpu.memory_space<vmem>>, vector<8x32xbf16>,
      %109 = arith.truncf %106 : vector<8x32xf32> to vector<8x32xbf16>
      %c0_68 = arith.constant 0 : index
      %c0_69 = arith.constant 0 : index
      %110 = vector.load %arg13[%c0_68, %c0_69] : memref<8x32xbf16, #tpu.memory_space<vmem>>, vector<8x32xbf16>
      tpu.vector_store %arg13[%c0_68, %c0_69], %109 {strides = array<i32>} : memref<8x32xbf16, #tpu.memory_space<vmem>>, vector<8x32xbf16>,
    } else {
    }
    %c8_i32 = arith.constant 8 : i32
    %3 = arith.muli %arg1, %c8_i32 : i32
    %4 = tpu.assume_multiple %3, 8 : i32
    %c0 = arith.constant 0 : index
    %5 = arith.index_cast %4 : i32 to index
    %c0_1 = arith.constant 0 : index
    %6 = vector.load %arg2[%c0, %5, %c0_1] : memref<1x8x32xbf16, #tpu.memory_space<vmem>>, vector<1x8x32xbf16>
    %7 = vector.shape_cast %6 : vector<1x8x32xbf16> to vector<8x32xbf16>
    %c0_2 = arith.constant 0 : index
    %c0_3 = arith.constant 0 : index
    %8 = vector.load %arg3[%c0_2, %c0_3] : memref<32x32xbf16, #tpu.memory_space<vmem>>, vector<32x32xbf16>
    %cst = arith.constant dense<0.000000e+00> : vector<8x32xf32>
    %9 = tpu.matmul %7, %8, %cst {dimension_numbers = #tpu.dot_dimension_numbers<[1], [0], [0], [1], [0, 0, 1, 1], [], []>} : vector<8x32xbf16>, vector<32x32xbf16>, vector<8x32xf32> -> vector<8x32xf32>
    %c0_4 = arith.constant 0 : index
    %c0_5 = arith.constant 0 : index
    %10 = vector.load %arg4[%c0_4, %c0_5] : memref<1x32xf32, #tpu.memory_space<vmem>>, vector<1x32xf32>
    %11 = vector.broadcast %10 : vector<1x32xf32> to vector<8x32xf32>
    %12 = arith.addf %9, %11 : vector<8x32xf32>
    %13 = arith.truncf %12 : vector<8x32xf32> to vector<8x32xbf16>
    %14 = vector.extract_strided_slice %13 {offsets = [0, 0], sizes = [8, 8], strides = [1, 1]} : vector<8x32xbf16> to vector<8x8xbf16>
    %c0_6 = arith.constant 0 : index
    %c0_7 = arith.constant 0 : index
    %15 = vector.load %arg12[%c0_6, %c0_7] : memref<8x32xbf16, #tpu.memory_space<vmem>>, vector<8x8xbf16>
    %c0_8 = arith.constant 0 : index
    %c0_9 = arith.constant 0 : index
    %16 = vector.load %arg13[%c0_8, %c0_9] : memref<8x32xbf16, #tpu.memory_space<vmem>>, vector<8x8xbf16>
    %cst_10 = arith.constant dense<0.000000e+00> : vector<8x8xf32>
    %17 = tpu.matmul %14, %15, %cst_10 {dimension_numbers = #tpu.dot_dimension_numbers<[1], [1], [0], [0], [0, 0, 1, 0], [], []>} : vector<8x8xbf16>, vector<8x8xbf16>, vector<8x8xf32> -> vector<8x8xf32>
    %cst_11 = arith.constant dense<0xFF800000> : vector<8xf32>
    %18 = vector.multi_reduction <maximumf>, %17, %cst_11 [1] : vector<8x8xf32> to vector<8xf32>
    %19 = vector.shape_cast %18 : vector<8xf32> to vector<8x1xf32>
    %20 = vector.broadcast %19 : vector<8x1xf32> to vector<8x8xf32>
    %21 = arith.subf %17, %20 : vector<8x8xf32>
    %22 = math.exp %21 : vector<8x8xf32>
    %cst_12 = arith.constant dense<0.000000e+00> : vector<8xf32>
    %23 = vector.multi_reduction <add>, %22, %cst_12 [1] : vector<8x8xf32> to vector<8xf32>
    %24 = vector.shape_cast %23 : vector<8xf32> to vector<8x1xf32>
    %25 = arith.truncf %22 : vector<8x8xf32> to vector<8x8xbf16>
    %cst_13 = arith.constant dense<0.000000e+00> : vector<8x8xf32>
    %26 = tpu.matmul %25, %16, %cst_13 {dimension_numbers = #tpu.dot_dimension_numbers<[1], [0], [0], [1], [0, 0, 1, 1], [], []>} : vector<8x8xbf16>, vector<8x8xbf16>, vector<8x8xf32> -> vector<8x8xf32>
    %27 = tpu.reciprocal %24 {approx = true} : vector<8x1xf32> -> vector<8x1xf32>
    %28 = vector.broadcast %27 : vector<8x1xf32> to vector<8x8xf32>
    %29 = arith.mulf %26, %28 : vector<8x8xf32>
    %30 = arith.truncf %29 : vector<8x8xf32> to vector<8x8xbf16>
    %c0_14 = arith.constant 0 : index
    %c0_15 = arith.constant 0 : index
    %31 = vector.load %arg14[%c0_14, %c0_15] : memref<8x32xbf16, #tpu.memory_space<vmem>>, vector<8x8xbf16>
    tpu.vector_store %arg14[%c0_14, %c0_15], %30 {strides = array<i32>} : memref<8x32xbf16, #tpu.memory_space<vmem>>, vector<8x8xbf16>,
    %32 = vector.extract_strided_slice %13 {offsets = [0, 8], sizes = [8, 8], strides = [1, 1]} : vector<8x32xbf16> to vector<8x8xbf16>
    %c0_16 = arith.constant 0 : index
    %c8 = arith.constant 8 : index
    %33 = vector.load %arg12[%c0_16, %c8] : memref<8x32xbf16, #tpu.memory_space<vmem>>, vector<8x8xbf16>
    %c0_17 = arith.constant 0 : index
    %c8_18 = arith.constant 8 : index
    %34 = vector.load %arg13[%c0_17, %c8_18] : memref<8x32xbf16, #tpu.memory_space<vmem>>, vector<8x8xbf16>
    %cst_19 = arith.constant dense<0.000000e+00> : vector<8x8xf32>
    %35 = tpu.matmul %32, %33, %cst_19 {dimension_numbers = #tpu.dot_dimension_numbers<[1], [1], [0], [0], [0, 0, 1, 0], [], []>} : vector<8x8xbf16>, vector<8x8xbf16>, vector<8x8xf32> -> vector<8x8xf32>
    %cst_20 = arith.constant dense<0xFF800000> : vector<8xf32>
    %36 = vector.multi_reduction <maximumf>, %35, %cst_20 [1] : vector<8x8xf32> to vector<8xf32>
    %37 = vector.shape_cast %36 : vector<8xf32> to vector<8x1xf32>
    %38 = vector.broadcast %37 : vector<8x1xf32> to vector<8x8xf32>
    %39 = arith.subf %35, %38 : vector<8x8xf32>
    %40 = math.exp %39 : vector<8x8xf32>
    %cst_21 = arith.constant dense<0.000000e+00> : vector<8xf32>
    %41 = vector.multi_reduction <add>, %40, %cst_21 [1] : vector<8x8xf32> to vector<8xf32>
    %42 = vector.shape_cast %41 : vector<8xf32> to vector<8x1xf32>
    %43 = arith.truncf %40 : vector<8x8xf32> to vector<8x8xbf16>
    %cst_22 = arith.constant dense<0.000000e+00> : vector<8x8xf32>
    %44 = tpu.matmul %43, %34, %cst_22 {dimension_numbers = #tpu.dot_dimension_numbers<[1], [0], [0], [1], [0, 0, 1, 1], [], []>} : vector<8x8xbf16>, vector<8x8xbf16>, vector<8x8xf32> -> vector<8x8xf32>
    %45 = tpu.reciprocal %42 {approx = true} : vector<8x1xf32> -> vector<8x1xf32>
    %46 = vector.broadcast %45 : vector<8x1xf32> to vector<8x8xf32>
    %47 = arith.mulf %44, %46 : vector<8x8xf32>
    %48 = arith.truncf %47 : vector<8x8xf32> to vector<8x8xbf16>
    %c0_23 = arith.constant 0 : index
    %c8_24 = arith.constant 8 : index
    %49 = vector.load %arg14[%c0_23, %c8_24] : memref<8x32xbf16, #tpu.memory_space<vmem>>, vector<8x8xbf16>
    tpu.vector_store %arg14[%c0_23, %c8_24], %48 {strides = array<i32>} : memref<8x32xbf16, #tpu.memory_space<vmem>>, vector<8x8xbf16>,
    %50 = vector.extract_strided_slice %13 {offsets = [0, 16], sizes = [8, 8], strides = [1, 1]} : vector<8x32xbf16> to vector<8x8xbf16>
    %c0_25 = arith.constant 0 : index
    %c16 = arith.constant 16 : index
    %51 = vector.load %arg12[%c0_25, %c16] : memref<8x32xbf16, #tpu.memory_space<vmem>>, vector<8x8xbf16>
    %c0_26 = arith.constant 0 : index
    %c16_27 = arith.constant 16 : index
    %52 = vector.load %arg13[%c0_26, %c16_27] : memref<8x32xbf16, #tpu.memory_space<vmem>>, vector<8x8xbf16>
    %cst_28 = arith.constant dense<0.000000e+00> : vector<8x8xf32>
    %53 = tpu.matmul %50, %51, %cst_28 {dimension_numbers = #tpu.dot_dimension_numbers<[1], [1], [0], [0], [0, 0, 1, 0], [], []>} : vector<8x8xbf16>, vector<8x8xbf16>, vector<8x8xf32> -> vector<8x8xf32>
    %cst_29 = arith.constant dense<0xFF800000> : vector<8xf32>
    %54 = vector.multi_reduction <maximumf>, %53, %cst_29 [1] : vector<8x8xf32> to vector<8xf32>
    %55 = vector.shape_cast %54 : vector<8xf32> to vector<8x1xf32>
    %56 = vector.broadcast %55 : vector<8x1xf32> to vector<8x8xf32>
    %57 = arith.subf %53, %56 : vector<8x8xf32>
    %58 = math.exp %57 : vector<8x8xf32>
    %cst_30 = arith.constant dense<0.000000e+00> : vector<8xf32>
    %59 = vector.multi_reduction <add>, %58, %cst_30 [1] : vector<8x8xf32> to vector<8xf32>
    %60 = vector.shape_cast %59 : vector<8xf32> to vector<8x1xf32>
    %61 = arith.truncf %58 : vector<8x8xf32> to vector<8x8xbf16>
    %cst_31 = arith.constant dense<0.000000e+00> : vector<8x8xf32>
    %62 = tpu.matmul %61, %52, %cst_31 {dimension_numbers = #tpu.dot_dimension_numbers<[1], [0], [0], [1], [0, 0, 1, 1], [], []>} : vector<8x8xbf16>, vector<8x8xbf16>, vector<8x8xf32> -> vector<8x8xf32>
    %63 = tpu.reciprocal %60 {approx = true} : vector<8x1xf32> -> vector<8x1xf32>
    %64 = vector.broadcast %63 : vector<8x1xf32> to vector<8x8xf32>
    %65 = arith.mulf %62, %64 : vector<8x8xf32>
    %66 = arith.truncf %65 : vector<8x8xf32> to vector<8x8xbf16>
    %c0_32 = arith.constant 0 : index
    %c16_33 = arith.constant 16 : index
    %67 = vector.load %arg14[%c0_32, %c16_33] : memref<8x32xbf16, #tpu.memory_space<vmem>>, vector<8x8xbf16>
    tpu.vector_store %arg14[%c0_32, %c16_33], %66 {strides = array<i32>} : memref<8x32xbf16, #tpu.memory_space<vmem>>, vector<8x8xbf16>,
    %68 = vector.extract_strided_slice %13 {offsets = [0, 24], sizes = [8, 8], strides = [1, 1]} : vector<8x32xbf16> to vector<8x8xbf16>
    %c0_34 = arith.constant 0 : index
    %c24 = arith.constant 24 : index
    %69 = vector.load %arg12[%c0_34, %c24] : memref<8x32xbf16, #tpu.memory_space<vmem>>, vector<8x8xbf16>
    %c0_35 = arith.constant 0 : index
    %c24_36 = arith.constant 24 : index
    %70 = vector.load %arg13[%c0_35, %c24_36] : memref<8x32xbf16, #tpu.memory_space<vmem>>, vector<8x8xbf16>
    %cst_37 = arith.constant dense<0.000000e+00> : vector<8x8xf32>
    %71 = tpu.matmul %68, %69, %cst_37 {dimension_numbers = #tpu.dot_dimension_numbers<[1], [1], [0], [0], [0, 0, 1, 0], [], []>} : vector<8x8xbf16>, vector<8x8xbf16>, vector<8x8xf32> -> vector<8x8xf32>
    %cst_38 = arith.constant dense<0xFF800000> : vector<8xf32>
    %72 = vector.multi_reduction <maximumf>, %71, %cst_38 [1] : vector<8x8xf32> to vector<8xf32>
    %73 = vector.shape_cast %72 : vector<8xf32> to vector<8x1xf32>
    %74 = vector.broadcast %73 : vector<8x1xf32> to vector<8x8xf32>
    %75 = arith.subf %71, %74 : vector<8x8xf32>
    %76 = math.exp %75 : vector<8x8xf32>
    %cst_39 = arith.constant dense<0.000000e+00> : vector<8xf32>
    %77 = vector.multi_reduction <add>, %76, %cst_39 [1] : vector<8x8xf32> to vector<8xf32>
    %78 = vector.shape_cast %77 : vector<8xf32> to vector<8x1xf32>
    %79 = arith.truncf %76 : vector<8x8xf32> to vector<8x8xbf16>
    %cst_40 = arith.constant dense<0.000000e+00> : vector<8x8xf32>
    %80 = tpu.matmul %79, %70, %cst_40 {dimension_numbers = #tpu.dot_dimension_numbers<[1], [0], [0], [1], [0, 0, 1, 1], [], []>} : vector<8x8xbf16>, vector<8x8xbf16>, vector<8x8xf32> -> vector<8x8xf32>
    %81 = tpu.reciprocal %78 {approx = true} : vector<8x1xf32> -> vector<8x1xf32>
    %82 = vector.broadcast %81 : vector<8x1xf32> to vector<8x8xf32>
    %83 = arith.mulf %80, %82 : vector<8x8xf32>
    %84 = arith.truncf %83 : vector<8x8xf32> to vector<8x8xbf16>
    %c0_41 = arith.constant 0 : index
    %c24_42 = arith.constant 24 : index
    %85 = vector.load %arg14[%c0_41, %c24_42] : memref<8x32xbf16, #tpu.memory_space<vmem>>, vector<8x8xbf16>
    tpu.vector_store %arg14[%c0_41, %c24_42], %84 {strides = array<i32>} : memref<8x32xbf16, #tpu.memory_space<vmem>>, vector<8x8xbf16>,
    %c0_43 = arith.constant 0 : index
    %c0_44 = arith.constant 0 : index
    %86 = vector.load %arg14[%c0_43, %c0_44] : memref<8x32xbf16, #tpu.memory_space<vmem>>, vector<8x32xbf16>
    %c0_45 = arith.constant 0 : index
    %c0_46 = arith.constant 0 : index
    %87 = vector.load %arg9[%c0_45, %c0_46] : memref<32x32xbf16, #tpu.memory_space<vmem>>, vector<32x32xbf16>
    %cst_47 = arith.constant dense<0.000000e+00> : vector<8x32xf32>
    %88 = tpu.matmul %86, %87, %cst_47 {dimension_numbers = #tpu.dot_dimension_numbers<[1], [0], [0], [1], [0, 0, 1, 1], [], []>} : vector<8x32xbf16>, vector<32x32xbf16>, vector<8x32xf32> -> vector<8x32xf32>
    %c0_48 = arith.constant 0 : index
    %c0_49 = arith.constant 0 : index
    %89 = vector.load %arg10[%c0_48, %c0_49] : memref<1x32xf32, #tpu.memory_space<vmem>>, vector<1x32xf32>
    %90 = vector.broadcast %89 : vector<1x32xf32> to vector<8x32xf32>
    %91 = arith.addf %88, %90 : vector<8x32xf32>
    %c0_50 = arith.constant 0 : index
    %c0_51 = arith.constant 0 : index
    %c0_52 = arith.constant 0 : index
    %92 = vector.load %arg11[%c0_50, %c0_51, %c0_52] : memref<1x8x32xf32, #tpu.memory_space<vmem>>, vector<1x8x32xf32>
    %93 = vector.shape_cast %92 : vector<1x8x32xf32> to vector<8x32xf32>
    %94 = vector.shape_cast %91 : vector<8x32xf32> to vector<1x8x32xf32>
    tpu.vector_store %arg11[%c0_50, %c0_51, %c0_52], %94 {strides = array<i32>} : memref<1x8x32xf32, #tpu.memory_space<vmem>>, vector<1x8x32xf32>,
    return
  }
  func.func @transform_0(%arg0: i32, %arg1: i32) -> (i32, i32, i32) {
    %c0_i32 = arith.constant 0 : i32
    %c0_i32_0 = arith.constant 0 : i32
    %c0_i32_1 = arith.constant 0 : i32
    return %arg0, %c0_i32, %c0_i32_0 : i32, i32, i32
  }
  func.func @transform_1(%arg0: i32, %arg1: i32) -> (i32, i32) {
    %c0_i32 = arith.constant 0 : i32
    %c0_i32_0 = arith.constant 0 : i32
    %c0_i32_1 = arith.constant 0 : i32
    return %c0_i32, %c0_i32_0 : i32, i32
  }
  func.func @transform_2(%arg0: i32, %arg1: i32) -> (i32, i32) {
    %c0_i32 = arith.constant 0 : i32
    %c0_i32_0 = arith.constant 0 : i32
    %c0_i32_1 = arith.constant 0 : i32
    return %c0_i32, %c0_i32_0 : i32, i32
  }
  func.func @transform_3(%arg0: i32, %arg1: i32) -> (i32, i32) {
    %c0_i32 = arith.constant 0 : i32
    %c0_i32_0 = arith.constant 0 : i32
    %c0_i32_1 = arith.constant 0 : i32
    return %c0_i32, %c0_i32_0 : i32, i32
  }
  func.func @transform_4(%arg0: i32, %arg1: i32) -> (i32, i32) {
    %c0_i32 = arith.constant 0 : i32
    %c0_i32_0 = arith.constant 0 : i32
    %c0_i32_1 = arith.constant 0 : i32
    return %c0_i32, %c0_i32_0 : i32, i32
  }
  func.func @transform_5(%arg0: i32, %arg1: i32) -> (i32, i32) {
    %c0_i32 = arith.constant 0 : i32
    %c0_i32_0 = arith.constant 0 : i32
    %c0_i32_1 = arith.constant 0 : i32
    return %c0_i32, %c0_i32_0 : i32, i32
  }
  func.func @transform_6(%arg0: i32, %arg1: i32) -> (i32, i32) {
    %c0_i32 = arith.constant 0 : i32
    %c0_i32_0 = arith.constant 0 : i32
    %c0_i32_1 = arith.constant 0 : i32
    return %c0_i32, %c0_i32_0 : i32, i32
  }
  func.func @transform_7(%arg0: i32, %arg1: i32) -> (i32, i32) {
    %c0_i32 = arith.constant 0 : i32
    %c0_i32_0 = arith.constant 0 : i32
    %c0_i32_1 = arith.constant 0 : i32
    return %c0_i32, %c0_i32_0 : i32, i32
  }
  func.func @transform_8(%arg0: i32, %arg1: i32) -> (i32, i32) {
    %c0_i32 = arith.constant 0 : i32
    %c0_i32_0 = arith.constant 0 : i32
    %c0_i32_1 = arith.constant 0 : i32
    return %c0_i32, %c0_i32_0 : i32, i32
  }
  func.func @transform_9(%arg0: i32, %arg1: i32) -> (i32, i32, i32) {
    %c0_i32 = arith.constant 0 : i32
    %c0_i32_0 = arith.constant 0 : i32
    return %arg0, %arg1, %c0_i32 : i32, i32, i32
  }
}

</mosaic_0001>

<bundles_post_ra>
// kernel: tpu_custom_call.1
= control target key start
LH: loop header
LB: loop body
LE: loop exit
PB: predicated region body
PF: predicated region fallthrough
CT: control target
= control target key end

     0   :  { %s2197_s0 = inlined_call_operand.hbm [shape: bf16[2,8,32], index: 0, kind: input, shape index: {}]   ;;  %s2198_s1 = inlined_call_operand.hbm [shape: bf16[32,32], index: 1, kind: input, shape index: {}]   ;;  %s2199_s2 = inlined_call_operand.vmem [shape: f32[1,32], index: 2, kind: input, shape index: {}]   ;;  %s2200_s3 = inlined_call_operand.hbm [shape: bf16[32,32], index: 3, kind: input, shape index: {}]   ;;  %s2201_s4 = inlined_call_operand.vmem [shape: f32[1,32], index: 4, kind: input, shape index: {}]   ;;  %s2202_s5 = inlined_call_operand.vmem [shape: bf16[32,32], index: 5, kind: input, shape index: {}]   ;;  %s2203_s6 = inlined_call_operand.vmem [shape: f32[1,32], index: 6, kind: input, shape index: {}]   ;;  %s2204_s7 = inlined_call_operand.hbm [shape: bf16[32,32], index: 7, kind: input, shape index: {}]   ;;  %s2205_s8 = inlined_call_operand.vmem [shape: f32[1,32], index: 8, kind: input, shape index: {}]   ;;  %s2206_s9 = inlined_call_operand.hbm [shape: f32[2,8,32], index: 9, kind: output, shape index: {}]  }
   0x1   :  { %2228 = sst [smem:[#allocation24_spill]] %s2197_s0 }
   0x2   :  { %2229 = sst [smem:[#allocation25_spill]] %s2198_s1 }
   0x3   :  { %14 = vsyncpa [#allocation6], 0 }
   0x4   :  { %15 = vsyncpa [#allocation9], 0 }
   0x5   :  { %16 = vsyncpa [#allocation12], 0 }
   0x6   :  { %17 = vsyncpa [#allocation7], 0 }
   0x7   :  { %19 = vsyncpa [#allocation7 + $0x1], 0  ;;  %s1844_s30 = smov 0   ;;  %s1846_s10 = smov 0  }
   0x8   :  { %s1848_s11 = smov 0   ;;  %s1850_s12 = smov 0  }
   0x9   :  { %s1852_s13 = smov 0   ;;  %s1854_s14 = smov 0  }
   0xa LB: > { %2230 = sst [smem:[#allocation18_spill]] %s1757_s30  ;;  %s1779_s15 = smov [#allocation8]   ;;  %s1777_s14 = sphi %s1854_s14, %s25_s14   ;;  %s1773_s13 = sphi %s1852_s13, %s2263_s13   ;;  %s1769_s12 = sphi %s1850_s12, %s2262_s12   ;;  %s1765_s11 = sphi %s1848_s11, %s2261_s11   ;;  %s1761_s10 = sphi %s1846_s10, %s2265_s10   ;;  %s1757_s30 = sphi %s1844_s30, %s2264_s30  }
   0xb   : > { %2231 = sst [smem:[#allocation19_spill]] %s1765_s11  ;;  %s289_s16 = sshll.u32 %s1779_s15, 4  ;;  %s290_s16 = int_to_ptr.vmem [resolvable:$true] %s289_s16 }
   0xc   : > { %2232 = sst [smem:[#allocation20_spill]] %s1773_s13  ;;  %s1281_s17 = sadd.s32 4294967295, %s1777_s14  }
   0xd   : > { %p1283_p0 = scmp.ge.s32.totalorder %s1777_s14, 1  ;;  %p1878_p1 = scmp.eq.s32.totalorder %s1281_s17, 0 }
   0xe   : > { %p264_p2 = scmp.lt.s32.totalorder %s1777_s14, 3  ;;  %s2236_s1 = sld [smem:[#allocation25_spill]] }
   0xf   : > { %s2233_s18 = scalar_select %p1878_p1, 1, 0 }
  0x10   : > { %p1883_p3 = pnand %p1283_p0, %p264_p2 }
  0x12   : > { %s2234_s19 = scalar_select %p1883_p3, 1, 0 }
  0x13   : > { %p2207_p4 = pneg %p1883_p3 }
  0x14   : > { %s1573_s23 = scalar_lea.hbm %s2236_s1, 256 }
  0x15   : > { %p1894_p5 = pnand %p2207_p4, %p1878_p1  ;;  %p1574_p6 = scmp.ne.s32.totalorder %s2236_s1, %s1573_s23 }
  0x16   : > { %p1580_p10 = scmp.lt.u32.totalorder %s1573_s23, %s2236_s1 }
  0x17   : > { %s2235_s20 = scalar_select %p1894_p5, 1, 0 }
  0x18   : > { %p1906_p7 = pneg %p1894_p5 }
  0x1a   : > { %s2237_s26 = scalar_select %p1906_p7, 1, 0 }
  0x1b   : > { %p1576_p8 = pnand %p1906_p7, %p1574_p6 }
  0x1d   : > { %p1577_p9 = pneg %p1576_p8 }
  0x1f   : > { %p1582_p11 = pnand %p1580_p10, %p1577_p9 }
  0x21   : > { %1585 = shalt.err (!%p1582_p11)
}
  0x22   : > { %s1586_s29 = scalar_lea.vmem %s290_s16, 256  ;;  %p1594_p2 = scmp.lt.s32.totalorder %s290_s16, %s290_s16 }
  0x23   : > { %p1587_p12 = scmp.ne.s32.totalorder %s290_s16, %s1586_s29  ;;  %p1595_p4 = scmp.lt.s32.totalorder %s1586_s29, %s1586_s29 }
  0x25   : > { %p1589_p13 = pnand %p1587_p12, %p1906_p7  ;;  %p1596_p3 = por %p1595_p4, %p1594_p2 }
  0x27   : > { %p1590_p0 = pneg %p1589_p13 }
  0x29   : > { %p1597_p1 = pnand %p1596_p3, %p1590_p0 }
  0x2b   : > { %1600 = shalt.err (!%p1597_p1)
}
  0x2c   : > { %s2212_s15 = smov 64   ;;  %s2214_s21 = smov 4  }
  0x2d   : > { %1463 = dma.hbm_to_vmem [thread:$0]  (!%p1894_p5), %s2236_s1, 256, %s290_s16, [#allocation9], %s2212_s15, %s2212_s15, %s2214_s21  }
  0x2e   : > { %s1282_s24 = sadd.s32 4294967294, %s1777_s14   ;;  %s37_s25 = sadd.s32 1, %s1773_s13 }
  0x2f   : > { %p39_p1 = scmp.ge.s32.totalorder %s37_s25, 2  ;;  %s44_s27 = sadd.s32 1, %s1765_s11 }
  0x30   : > { %p57_p3 = scmp.ne.s32.totalorder %s1761_s10, %s1757_s30  ;;  %p250_p4 = scmp.ne.s32.totalorder %s1765_s11, %s1761_s10 }
  0x31   : > { %s2267_s25 = smov (%p39_p1, %s37_s25), 0  ;;  %p2239_p6 = scmp.ne.s32.totalorder %s2233_s18, 0 }
  0x32   : > { %2238 = sst [smem:[#allocation21_spill]] %s2267_s25  ;;  %p251_p9 = scmp.eq.s32.totalorder %s1281_s17, 1 }
  0x33   : > { %p1936_p8 = por %p2239_p6, %p57_p3  ;;  %s41_s16 = ssub.s32 %s1773_s13, %s2267_s25 }
  0x34   : > { %p257_p10 = scmp.eq.s32.totalorder %s1282_s24, 1  ;;  %p42_p11 = scmp.eq.s32.totalorder %s41_s16, 0 }
  0x35   : > { %s2240_s28 = scalar_select %p1936_p8, 1, 0 }
  0x36   : > { %p1944_p12 = por %p251_p9, %p250_p4  ;;  %p1948_p13 = por %p257_p10, %p57_p3 }
  0x37   : > { %s1284_s23 = sshll.u32 %s1769_s12, 6  ;;  %s2245_s0 = sld [smem:[#allocation24_spill]] }
  0x38   : > { %s2241_s29 = scalar_select %p1944_p12, 1, 0 }
  0x39   : > { %s2242_s22 = scalar_select %p1948_p13, 1, 0 }
  0x3a   : > { %s1954_s15 = scalar_select %p42_p11, %s1765_s11, %s44_s27  }
  0x3b   : > { %2243 = sst [smem:[#allocation22_spill]] %s2242_s22  ;;  %s1782_s17 = smov [#allocation5]  }
  0x3c   : > { %2244 = sst [smem:[#allocation23_spill]] %s1954_s15  ;;  %s279_s24 = sshll.u32 %s1782_s17, 4  ;;  %s280_s24 = int_to_ptr.vmem [resolvable:$true] %s279_s24 }
  0x3d   : > { %s1959_s30 = scalar_lea.hbm %s2245_s0, %s1284_s23  ;;  %p2246_p0 = scmp.ne.s32.totalorder %s2234_s19, 0 }
  0x3e   : > { %s1783_s27 = smov [#allocation10]   ;;  %s1601_s21 = scalar_lea.hbm %s1959_s30, 64 }
  0x3f   : > { %p2247_p2 = pneg %p2246_p0  ;;  %s305_s1 = sshll.u32 %s1783_s27, 4  ;;  %s306_s1 = int_to_ptr.vmem [resolvable:$true] %s305_s1 }
  0x40   : > { %p1602_p3 = scmp.ne.s32.totalorder %s1959_s30, %s1601_s21  ;;  %s1606_s25 = scalar_lea.hbm %s2245_s0, 128 }
  0x41   : > { %p1966_p1 = pnand %p2247_p2, %p1936_p8  ;;  %p1607_p10 = scmp.lt.u32.totalorder %s1959_s30, %s2245_s0 }
  0x42   : > { %p1608_p11 = scmp.lt.u32.totalorder %s1606_s25, %s1601_s21  ;;  %p1610_p13 = scmp.lt.u32.totalorder %s1601_s21, %s1959_s30 }
  0x43   : > { %p1603_p4 = pneg %p1966_p1 }
  0x44   : > { %p1609_p2 = por %p1608_p11, %p1607_p10 }
  0x45   : > { %p1604_p6 = pnand %p1603_p4, %p1602_p3 }
  0x46   : > { %p1611_p12 = por %p1610_p13, %p1609_p2 }
  0x47   : > { %p1605_p9 = pneg %p1604_p6 }
  0x49   : > { %p1612_p8 = pnand %p1611_p12, %p1605_p9 }
  0x4b   : > { %1615 = shalt.err (!%p1612_p8)
}
  0x4c   : > { %s1616_s27 = scalar_lea.vmem %s280_s24, 64  ;;  %p1624_p5 = scmp.lt.s32.totalorder %s280_s24, %s280_s24 }
  0x4d   : > { %p1617_p0 = scmp.ne.s32.totalorder %s280_s24, %s1616_s27  ;;  %p1625_p7 = scmp.lt.s32.totalorder %s1616_s27, %s1616_s27 }
  0x4f   : > { %p1619_p3 = pnand %p1617_p0, %p1603_p4  ;;  %p1626_p10 = por %p1625_p7, %p1624_p5 }
  0x51   : > { %p1620_p6 = pneg %p1619_p3 }
  0x53   : > { %p1627_p11 = pnand %p1626_p10, %p1620_p6 }
  0x55   : > { %1630 = shalt.err (!%p1627_p11)
}
  0x56   : > { %1460 = dma.hbm_to_vmem [thread:$0]  (!%p1966_p1), %s1959_s30, 64, %s280_s24, [#allocation6]  }
  0x57   : > { %s1631_s25 = scalar_lea.hbm %s2200_s3, 256  ;;  %p2249_p12 = scmp.ne.s32.totalorder %s2237_s26, 0 }
  0x58   : > { %p1632_p8 = scmp.ne.s32.totalorder %s2200_s3, %s1631_s25  ;;  %p1638_p5 = scmp.lt.u32.totalorder %s1631_s25, %s2200_s3 }
  0x5a   : > { %p1634_p13 = pnand %p1632_p8, %p2249_p12 }
  0x5c   : > { %p1635_p0 = pneg %p1634_p13 }
  0x5e   : > { %p1640_p7 = pnand %p1638_p5, %p1635_p0 }
  0x60   : > { %1643 = shalt.err (!%p1640_p7)
}
  0x61   : > { %s1644_s16 = scalar_lea.vmem %s306_s1, 256  ;;  %p1652_p2 = scmp.lt.s32.totalorder %s306_s1, %s306_s1 }
  0x62   : > { %p1645_p1 = scmp.ne.s32.totalorder %s306_s1, %s1644_s16  ;;  %p1653_p3 = scmp.lt.s32.totalorder %s1644_s16, %s1644_s16 }
  0x64   : > { %p1647_p4 = pnand %p1645_p1, %p2249_p12  ;;  %p1654_p6 = por %p1653_p3, %p1652_p2 }
  0x66   : > { %p1648_p9 = pneg %p1647_p4 }
  0x68   : > { %p1655_p10 = pnand %p1654_p6, %p1648_p9 }
  0x6a   : > { %1658 = shalt.err (!%p1655_p10)
}
  0x6b   : > { %p2250_p11 = scmp.ne.s32.totalorder %s2235_s20, 0  ;;  %s2251_s30 = smov 4  }
  0x6c   : > { %s2252_s24 = smov 64   ;;  %s1784_s25 = smov [#allocation11]  }
  0x6d   : > { %1466 = dma.hbm_to_vmem [thread:$0]  (!%p2250_p11), %s2200_s3, 256, %s306_s1, [#allocation9], %s2252_s24, %s2252_s24, %s2251_s30  }
  0x6e   : > { %s327_s21 = sshll.u32 %s1784_s25, 4  ;;  %s1659_s27 = scalar_lea.hbm %s2204_s7, 256  ;;  %s328_s21 = int_to_ptr.vmem [resolvable:$true] %s327_s21 }
  0x6f   : > { %p1660_p8 = scmp.ne.s32.totalorder %s2204_s7, %s1659_s27  ;;  %p1666_p5 = scmp.lt.u32.totalorder %s1659_s27, %s2204_s7 }
  0x71   : > { %p1662_p13 = pnand %p1660_p8, %p2249_p12 }
  0x73   : > { %p1663_p0 = pneg %p1662_p13 }
  0x75   : > { %p1668_p7 = pnand %p1666_p5, %p1663_p0 }
  0x77   : > { %1671 = shalt.err (!%p1668_p7)
}
  0x78   : > { %s1672_s1 = scalar_lea.vmem %s328_s21, 256  ;;  %p1680_p2 = scmp.lt.s32.totalorder %s328_s21, %s328_s21 }
  0x79   : > { %p1673_p1 = scmp.ne.s32.totalorder %s328_s21, %s1672_s1  ;;  %p1681_p3 = scmp.lt.s32.totalorder %s1672_s1, %s1672_s1 }
  0x7b   : > { %p1675_p4 = pnand %p1673_p1, %p2249_p12  ;;  %p1682_p6 = por %p1681_p3, %p1680_p2 }
  0x7d   : > { %p1676_p9 = pneg %p1675_p4 }
  0x7f   : > { %p1683_p10 = pnand %p1682_p6, %p1676_p9 }
  0x81   : > { %1686 = shalt.err (!%p1683_p10)
}
  0x82   : > { %1469 = dma.hbm_to_vmem [thread:$0]  (!%p2250_p11), %s2204_s7, 256, %s328_s21, [#allocation12], %s2252_s24, %s2252_s24, %s2251_s30  }
  0x83   : > { %p2253_p8 = scmp.ne.s32.totalorder %s2234_s19, 0 }
  0x84   : > { %p2254_p12 = scmp.ne.s32.totalorder (!%p2253_p8), %s2240_s28, 0 }
  0x85   : > { %346 = sbr.rel (%p2253_p8) target bundleno = 1460 (0x5b4), region = 56 }
  0x8c   : > { %1740 = dma.done.wait (%p2254_p12), [#allocation6], 64  }
  0x8d   : > { %1742 = vsyncadd (%p2254_p12), [#allocation6], 4294967232  ;;  %p2255_p13 = scmp.ne.s32.totalorder %s2233_s18, 0 }
  0x8f   : > { %1744 = dma.done.wait (%p2255_p13), [#allocation9], 512  }
  0x90   : > { %1746 = vsyncadd (%p2255_p13), [#allocation9], 4294966784 }
  0x91   : > { %1748 = dma.done.wait (%p2255_p13), [#allocation12], 256  }
  0x92   : > { %1750 = vsyncadd (%p2255_p13), [#allocation12], 4294967040  ;;  %v1785_v0 = vmov 0.0   ;;  %vm1786_vm0 = vmmov 0   ;;  %v1543_v1 = vld [vmem:[#allocation10] sm:$0xff]   ;;  %v1544_v2 = vld [vmem:[#allocation10 + $0x8] sm:$0xff]  }
  0x93   : > { %1361 = vmatprep.subr.bf16.mxu0 %v1785_v0  ;;  %1365 = vmatprep.mubr.msk.bf16.mxu0 %vm1786_vm0, %v1785_v0  ;;  %v394_v3 = vld [vmem:[#allocation5] sm:$0xf]  ;;  %vm418_vm1 = vcmask 261120   ;;  %v1545_v4 = vld [vmem:[#allocation8] sm:$0xff]   ;;  %v1546_v5 = vld [vmem:[#allocation8 + $0x8] sm:$0xff]   ;;  %vm526_vm2 = vcmask 257024  }
  0x94   : > { %1369 = vmatprep.subr.bf16.mxu1 %v1785_v0  ;;  %1373 = vmatprep.mubr.msk.bf16.mxu1 %vm1786_vm0, %v1785_v0  ;;  %v535_v6 = vld [vmem:[#allocation5] sm:$0xf]  ;;  %v1547_v7 = vld [vmem:[%s2202_s5] sm:$0xff]   ;;  %v1548_v8 = vld [vmem:[%s2202_s5 + $0x8] sm:$0xff]   ;;  %vm606_vm3 = vcmask 64512   ;;  %s1787_s13 = smov 112  }
  0x95   : > { %1362 = vmatpush3.bf16.msra.mxu0 %v1543_v1  ;;  %1370 = vmatpush3.bf16.msra.mxu1 %v1547_v7  ;;  %v1293_v9 = vld [vmem:[%s2201_s4] ss:$0 sm:$0xff]  ;;  %s1788_s15 = smov 120   ;;  %s1789_s25 = smov 104   ;;  %vm666_vm4 = vcmask 1043456   ;;  %vm713_vm5 = vcmask 60416  }
  0x96   : > { %1363 = vmatprep.subr.bf16.mxu0 %v1785_v0  ;;  %1371 = vmatprep.subr.bf16.mxu1 %v1785_v0  ;;  %v1301_v16 = vld [vmem:[%s2199_s2] ss:$0 sm:$0xff]  ;;  %s1790_s17 = smov 8   ;;  %s1791_s27 = smov 16   ;;  %vm841_vm6 = vcmask 126016   ;;  %vm968_vm7 = vcmask 191616  }
  0x97   : > { %v1297_v28 = vld [vmem:[%s2203_s6] ss:$0 sm:$0xff]  ;;  %s1792_s16 = smov 24   ;;  %vm1095_vm8 = vcmask 257216   ;;  %s386_s1 = sand.u32 1, %s1761_s10  }
  0x98   : > { %s1292_s0 = sshll.u32 %s386_s1, 3  ;;  %s1327_s19 = sshll.u32 %s1769_s12, 7 }
  0x99   : > { %1364 = vmatpush3.bf16.msra.mxu0 %v1544_v2  ;;  %1372 = vmatpush3.bf16.msra.mxu1 %v1548_v8  ;;  %s388_s20 = scalar_lea.vmem [#allocation13], %s1292_s0  ;;  %s2149_s30 = scalar_lea.hbm %s2206_s9, %s1327_s19 }
  0x9a   : > { %1377 = vmatprep.subr.bf16.mxu0 %v1785_v0  ;;  %1385 = vmatprep.subr.bf16.mxu1 %v1785_v0  ;;  %s1180_s26 = sshll.u32 %s388_s20, 4  ;;  %s1166_s12 = scalar_lea.sflag [#allocation7], %s386_s1  ;;  %s2151_s26 = int_to_ptr.vmem [resolvable:$true] %s1180_s26 }
  0x9b   : > { %s1687_s24 = scalar_lea.vmem %s2151_s26, 128  ;;  %p2256_p0 = scmp.ne.s32.totalorder %s2241_s29, 0 }
  0x9c   : > { %1366 = vmatmul.mubr.msk.bf16.vlgmr.msra.gmra.mrb[0].mxu0 %vm418_vm1, %v394_v3  ;;  %1374 = vmatmul.mubr.msk.bf16.vlgmr.msra.gmra.mrb[0].mxu1 %vm418_vm1, %v394_v3  ;;  %p1688_p11 = scmp.ne.s32.totalorder %s2151_s26, %s1687_s24 }
  0x9d   : > { %1378 = vmatpush3.bf16.msra.mxu0 %v1545_v4  ;;  %1381 = vmatprep.mubr.msk.bf16.mxu0 %vm1786_vm0, %v1785_v0 }
  0x9e   : > { %1379 = vmatprep.subr.bf16.mxu0 %v1785_v0  ;;  %1387 = vmatprep.mubr.msk.bf16.mxu1 %vm1786_vm0, %v1785_v0  ;;  %p1689_p5 = pnand %p1688_p11, %p2256_p0 }
  0xa0   : > { %p1690_p7 = pneg %p1689_p5 }
  0xa1   : > { %1380 = vmatpush3.bf16.msra.mxu0 %v1546_v5 }
  0xa2   : > { %1391 = vmatprep.subr.bf16.mxu0 %v1785_v0 }
  0xa4   : > { %1382 = vmatmul.mubr.msk.bf16.vlgmr.msra.gmra.mrb[4].mxu0 %vm418_vm1, %v535_v6 }
  0xa5   : > { %1393 = vmatprep.mubr.msk.bf16.mxu0 %vm1786_vm0, %v1785_v0 }
 0x16f   : > { %v456_v10 = vpop.f32.mrb[0].mxu0  ;;  %v519_v29 = vpop.f32.mrb[0].mxu1 }
 0x170   : > { %v457_v11 = vadd.f32 %v1293_v9, %v456_v10  ;;  %v1367_v12 = vpop.f32.mrb[1].mxu0  ;;  %v520_v30 = vadd.f32 %v1297_v28, %v519_v29  ;;  %v1375_v31 = vpop.f32.mrb[1].mxu1 }
 0x171   : > { %v459_v13 = vpop.f32.mrb[2].mxu0  ;;  %v522_v32 = vpop.f32.mrb[2].mxu1 }
 0x172   : > { %v525_v14 = vpack.c.bf16 %v457_v11, %v457_v11  ;;  %v1368_v15 = vpop.f32.mrb[3].mxu0  ;;  %v528_v33 = vpack.c.bf16 %v520_v30, %v520_v30  ;;  %v1376_v34 = vpop.f32.mrb[3].mxu1 }
 0x174   : > { %527 = vst.msk [vmem:[#allocation2] sm:$0xf] %vm526_vm2, %v525_v14  ;;  %529 = vst.msk [vmem:[#allocation3] sm:$0xf] %vm526_vm2, %v528_v33 }
 0x177   : > { %v597_v17 = vpop.f32.mrb[4].mxu0 }
 0x178   : > { %v1383_v18 = vpop.f32.mrb[5].mxu0  ;;  %v598_v19 = vadd.f32 %v1301_v16, %v597_v17 }
 0x179   : > { %v600_v20 = vpop.f32.mrb[6].mxu0 }
 0x17a   : > { %v1384_v21 = vpop.f32.mrb[7].mxu0  ;;  %v603_v26 = vpack.c.bf16 %v598_v19, %v598_v19 }
 0x17b   : > { %v604_v22 = vld [vmem:[#allocation2] sm:$0xf]  ;;  %v605_v35 = vld [vmem:[#allocation3] sm:$0xf] }
 0x17c   : > { %v1549_v23 = vld [vmem:[#allocation2] ss:$0 sps:$4 sm:$0xff]   ;;  %v611_v24 = vsel %vm606_vm3, %v604_v22, 0  ;;  %v668_v36 = vsel %vm666_vm4, %v605_v35, 0  ;;  %v1552_v1 = vld [vmem:[#allocation3] ss:$0 sps:$4 sm:$0xff]  }
 0x17d   : > { %v1550_v25 = vld [vmem:[#allocation2] ss:$0 sps:$4 sm:$0xff]   ;;  %1386 = vmatpush3.bf16.xpose.msra.mxu1 %v611_v24  ;;  %850 = vrot.lane.b32.xlu1 %v1549_v23, %s1787_s13  ;;  %v1553_v4 = vld [vmem:[#allocation3] ss:$0 sps:$4 sm:$0xff]  }
 0x17e   : > { %723 = vrot.lane.b32.xlu0 %v1550_v25, %s1788_s15  ;;  %1397 = vmatprep.subr.bf16.mxu1 %v1785_v0  ;;  %v1551_v27 = vld [vmem:[#allocation2] ss:$0 sps:$4 sm:$0xff]   ;;  %v1554_v8 = vld [vmem:[#allocation3] ss:$0 sps:$4 sm:$0xff]  }
 0x17f   : > { %1392 = vmatpush3.bf16.msra.mxu0 %v668_v36 }
 0x180   : > { %1403 = vmatprep.subr.bf16.mxu0 %v1785_v0 }
 0x181   : > { %845 = vrot.lane.b32.xlu1 %v603_v26, %s1787_s13 }
 0x182   : > { %718 = vrot.lane.b32.xlu0 %v603_v26, %s1788_s15 }
 0x184   : > { %1388 = vmatmul.mubr.msk.bf16.vlgmr.msra.gmra.mrb[4].mxu1 %vm606_vm3, %v603_v26 }
 0x185   : > { %972 = vrot.lane.b32.xlu1 %v603_v26, %s1789_s25  ;;  %1399 = vmatprep.mubr.msk.bf16.mxu1 %vm1786_vm0, %v1785_v0 }
 0x186   : > { %977 = vrot.lane.b32.xlu0 %v1551_v27, %s1789_s25 }
 0x1ef   : > { %v851_v39 = vpop.permute.xlu1 %850 }
 0x1f0   : > { %v724_v37 = vpop.permute.xlu0 %723  ;;  %v856_v41 = vsel %vm606_vm3, %v851_v39, 0 }
 0x1f1   : > { %v729_v38 = vsel %vm606_vm3, %v724_v37, 0 }
 0x1f2   : > { %1398 = vmatpush3.bf16.xpose.msra.mxu1 %v729_v38 }
 0x1f3   : > { %1409 = vmatprep.subr.bf16.mxu1 %v1785_v0  ;;  %v846_v43 = vpop.permute.xlu1 %845 }
 0x1f4   : > { %v719_v40 = vpop.permute.xlu0 %718 }
 0x1f7   : > { %v973_v45 = vpop.permute.xlu1 %972 }
 0x1f8   : > { %v978_v42 = vpop.permute.xlu0 %977 }
 0x1f9   : > { %1400 = vmatmul.mubr.msk.bf16.vlgmr.msra.gmra.mrb[8].mxu1 %vm606_vm3, %v719_v40  ;;  %v983_v44 = vsel %vm606_vm3, %v978_v42, 0 }
 0x1fa   : > { %1410 = vmatpush3.bf16.xpose.msra.mxu1 %v856_v41  ;;  %1411 = vmatprep.mubr.msk.bf16.mxu1 %vm1786_vm0, %v1785_v0 }
 0x1fb   : > { %1421 = vmatprep.subr.bf16.mxu1 %v1785_v0 }
 0x201   : > { %1412 = vmatmul.mubr.msk.bf16.vlgmr.msra.gmra.mrb[12].mxu1 %vm606_vm3, %v846_v43 }
 0x202   : > { %1422 = vmatpush3.bf16.xpose.msra.mxu1 %v983_v44  ;;  %1423 = vmatprep.mubr.msk.bf16.mxu1 %vm1786_vm0, %v1785_v0 }
 0x203   : > { %1433 = vmatprep.subr.bf16.mxu1 %v1785_v0 }
 0x209   : > { %1424 = vmatmul.mubr.msk.bf16.vlgmr.msra.gmra.mrb[16].mxu1 %vm606_vm3, %v973_v45 }
 0x20a   : > { %1437 = vmatprep.mubr.msk.bf16.mxu1 %vm1786_vm0, %v1785_v0 }
 0x257   : > { %v647_v46 = vpop.f32.mrb[4].mxu1 }
 0x258   : > { %v1389_v47 = vpop.f32.mrb[5].mxu1  ;;  %v653_v48 = vsel %vm606_vm3, %v647_v46, -inf }
 0x259   : > { %654 = vmax.xlane.f32.xlu0 %v653_v48  ;;  %v650_v49 = vpop.f32.mrb[6].mxu1 }
 0x25a   : > { %v1390_v50 = vpop.f32.mrb[7].mxu1 }
 0x2cc   : > { %v765_v51 = vpop.f32.mrb[8].mxu1 }
 0x2cd   : > { %v1401_v52 = vpop.f32.mrb[9].mxu1  ;;  %v771_v53 = vsel %vm606_vm3, %v765_v51, -inf }
 0x2ce   : > { %772 = vmax.xlane.f32.xlu1 %v771_v53  ;;  %v768_v54 = vpop.f32.mrb[10].mxu1 }
 0x2cf   : > { %v1402_v55 = vpop.f32.mrb[11].mxu1 }
 0x2d4   : > { %v892_v56 = vpop.f32.mrb[12].mxu1 }
 0x2d5   : > { %v1413_v57 = vpop.f32.mrb[13].mxu1  ;;  %v898_v58 = vsel %vm606_vm3, %v892_v56, -inf }
 0x2d6   : > { %899 = vmax.xlane.f32.xlu0 %v898_v58  ;;  %v895_v59 = vpop.f32.mrb[14].mxu1 }
 0x2d7   : > { %v1414_v60 = vpop.f32.mrb[15].mxu1 }
 0x2d8   : > { %v1556_v60 = vld [vmem:[#allocation11 + $0x8] sm:$0xff]  }
 0x2dc   : > { %v1019_v61 = vpop.f32.mrb[16].mxu1 }
 0x2dd   : > { %v1425_v62 = vpop.f32.mrb[17].mxu1  ;;  %v1025_v63 = vsel %vm606_vm3, %v1019_v61, -inf }
 0x2de   : > { %1026 = vmax.xlane.f32.xlu0 %v1025_v63  ;;  %v1022_v2 = vpop.f32.mrb[18].mxu1 }
 0x2df   : > { %784 = vrot.lane.b32.xlu1 %v1552_v1, %s1788_s15  ;;  %v1426_v3 = vpop.f32.mrb[19].mxu1 }
 0x2e3   : > { %1038 = vrot.lane.b32.xlu1 %v1553_v4, %s1789_s25 }
 0x2e6   : > { %v655_v5 = vpop.xlane.xlu0 %654 }
 0x2e7   : > { %v656_v6 = vsub.f32 %v647_v46, %v655_v5 }
 0x2e9   : > { %v657_v7 = vmul.f32 1.442695, %v656_v6 }
 0x2eb   : > { %1557 = vpow2.f32 %v657_v7 }
 0x2f4   : > { %911 = vrot.lane.b32.xlu0 %v1554_v8, %s1787_s13  ;;  %s1793_s13 = smov [#allocation13]  }
 0x2f5   : > { %v1558_v9 = vpop.eup %1557  ;;  %s1691_s15 = sshll.u32 %s1793_s13, 4  ;;  %s1692_s15 = int_to_ptr.vmem [resolvable:$false] %s1691_s15 }
 0x2f6   : > { %v662_v10 = vpack.c.bf16 %v1558_v9, %v1558_v9  ;;  %v659_v26 = vsel %vm606_vm3, %v1558_v9, 0.0  ;;  %s1693_s25 = scalar_lea.vmem %s1692_s15, 256  ;;  %p1694_p1 = scmp.lt.s32.totalorder %s2151_s26, %s1692_s15 }
 0x2f7   : > { %p1695_p4 = scmp.lt.s32.totalorder %s1693_s25, %s1687_s24 }
 0x2f8   : > { %1394 = vmatmul.mubr.msk.bf16.vlgmr.msra.gmra.mrb[8].mxu0 %vm606_vm3, %v662_v10  ;;  %v1322_v10 = vld [vmem:[%s2205_s8] ss:$0 sm:$0xff] }
 0x2f9   : > { %1405 = vmatprep.mubr.msk.bf16.mxu0 %vm1786_vm0, %v1785_v0  ;;  %p1696_p9 = por %p1695_p4, %p1694_p1 }
 0x2fb   : > { %p1697_p2 = pnand %p1696_p9, %p1690_p7 }
 0x35b   : > { %v773_v11 = vpop.xlane.xlu1 %772 }
 0x35c   : > { %v774_v12 = vsub.f32 %v765_v51, %v773_v11 }
 0x35e   : > { %v775_v13 = vmul.f32 1.442695, %v774_v12 }
 0x35f   : > { %v785_v14 = vpop.permute.xlu1 %784 }
 0x360   : > { %1559 = vpow2.f32 %v775_v13  ;;  %v790_v15 = vsel %vm666_vm4, %v785_v14, 0 }
 0x361   : > { %1404 = vmatpush3.bf16.msra.mxu0 %v790_v15 }
 0x362   : > { %1415 = vmatprep.subr.bf16.mxu0 %v1785_v0 }
 0x363   : > { %v900_v16 = vpop.xlane.xlu0 %899  ;;  %v1039_v29 = vpop.permute.xlu1 %1038 }
 0x364   : > { %v901_v17 = vsub.f32 %v892_v56, %v900_v16  ;;  %v1044_v32 = vsel %vm666_vm4, %v1039_v29, 0  ;;  %v1555_v56 = vld [vmem:[#allocation11] sm:$0xff]  }
 0x365   : > { %1434 = vmatpush3.bf16.msra.mxu1 %v1555_v56 }
 0x366   : > { %v902_v18 = vmul.f32 1.442695, %v901_v17  ;;  %1435 = vmatprep.subr.bf16.mxu1 %v1785_v0 }
 0x368   : > { %1561 = vpow2.f32 %v902_v18 }
 0x369   : > { %1436 = vmatpush3.bf16.msra.mxu1 %v1556_v60 }
 0x36a   : > { %v1560_v19 = vpop.eup %1559 }
 0x36b   : > { %v1027_v20 = vpop.xlane.xlu0 %1026  ;;  %v777_v21 = vsel %vm606_vm3, %v1560_v19, 0.0  ;;  %v780_v22 = vpack.c.bf16 %v1560_v19, %v1560_v19 }
 0x36c   : > { %v1028_v23 = vsub.f32 %v1019_v61, %v1027_v20  ;;  %778 = vadd.xlane.f32.xlu1 %v777_v21 }
 0x36d   : > { %1406 = vmatmul.mubr.msk.bf16.vlgmr.msra.gmra.mrb[12].mxu0 %vm606_vm3, %v780_v22 }
 0x36e   : > { %v1029_v24 = vmul.f32 1.442695, %v1028_v23  ;;  %1417 = vmatprep.mubr.msk.bf16.mxu0 %vm1786_vm0, %v1785_v0 }
 0x36f   : > { %v912_v25 = vpop.permute.xlu0 %911 }
 0x370   : > { %1563 = vpow2.f32 %v1029_v24  ;;  %v917_v27 = vsel %vm666_vm4, %v912_v25, 0  ;;  %660 = vadd.xlane.f32.xlu1 %v659_v26 }
 0x371   : > { %1416 = vmatpush3.bf16.msra.mxu0 %v917_v27 }
 0x372   : > { %v1562_v28 = vpop.eup %1561  ;;  %1427 = vmatprep.subr.bf16.mxu0 %v1785_v0 }
 0x373   : > { %v904_v30 = vsel %vm606_vm3, %v1562_v28, 0.0  ;;  %v907_v31 = vpack.c.bf16 %v1562_v28, %v1562_v28 }
 0x374   : > { %905 = vadd.xlane.f32.xlu0 %v904_v30 }
 0x375   : > { %1418 = vmatmul.mubr.msk.bf16.vlgmr.msra.gmra.mrb[16].mxu0 %vm606_vm3, %v907_v31 }
 0x376   : > { %1428 = vmatpush3.bf16.msra.mxu0 %v1044_v32  ;;  %1429 = vmatprep.mubr.msk.bf16.mxu0 %vm1786_vm0, %v1785_v0 }
 0x37a   : > { %v1564_v33 = vpop.eup %1563 }
 0x37b   : > { %v1031_v34 = vsel %vm606_vm3, %v1564_v33, 0.0  ;;  %v1034_v35 = vpack.c.bf16 %v1564_v33, %v1564_v33 }
 0x37c   : > { %1032 = vadd.xlane.f32.xlu0 %v1031_v34 }
 0x37d   : > { %1430 = vmatmul.mubr.msk.bf16.vlgmr.msra.gmra.mrb[20].mxu0 %vm606_vm3, %v1034_v35 }
 0x3cb   : > { %v704_v36 = vpop.f32.mrb[8].mxu0 }
 0x3cc   : > { %v1395_v37 = vpop.f32.mrb[9].mxu0 }
 0x3cd   : > { %v707_v38 = vpop.f32.mrb[10].mxu0 }
 0x3ce   : > { %v1396_v39 = vpop.f32.mrb[11].mxu0 }
 0x3f9   : > { %v779_v40 = vpop.xlane.xlu1 %778 }
 0x3fd   : > { %v661_v41 = vpop.xlane.xlu1 %660 }
 0x3fe   : > { %1565 = vrcp.f32 %v661_v41 }
 0x3ff   : > { %1567 = vrcp.f32 %v779_v40 }
 0x401   : > { %v906_v45 = vpop.xlane.xlu0 %905 }
 0x402   : > { %1569 = vrcp.f32 %v906_v45 }
 0x408   : > { %v1566_v42 = vpop.eup %1565 }
 0x409   : > { %v711_v43 = vmul.f32 %v1566_v42, %v704_v36  ;;  %v1568_v46 = vpop.eup %1567  ;;  %v1033_v51 = vpop.xlane.xlu0 %1032 }
 0x40a   : > { %1571 = vrcp.f32 %v1033_v51 }
 0x40b   : > { %v712_v44 = vpack.c.bf16 %v711_v43, %v711_v43 }
 0x40c   : > { %v1570_v54 = vpop.eup %1569 }
 0x40d   : > { %714 = vst.msk [vmem:[#allocation4] sm:$0xf] %vm713_vm5, %v712_v44 }
 0x414   : > { %v1572_v63 = vpop.eup %1571 }
 0x440   : > { %v826_v47 = vpop.f32.mrb[12].mxu0 }
 0x441   : > { %v833_v48 = vmul.f32 %v1568_v46, %v826_v47  ;;  %v1407_v49 = vpop.f32.mrb[13].mxu0 }
 0x442   : > { %v829_v50 = vpop.f32.mrb[14].mxu0 }
 0x443   : > { %v1330_v52 = vpack.c.bf16 %v833_v48, %v833_v48  ;;  %v1408_v53 = vpop.f32.mrb[15].mxu0 }
 0x445   : > { %838 = vrot.lane.b32.xlu0 %v1330_v52, %s1790_s17 }
 0x448   : > { %v953_v55 = vpop.f32.mrb[16].mxu0 }
 0x449   : > { %v960_v57 = vmul.f32 %v1570_v54, %v953_v55  ;;  %v1419_v58 = vpop.f32.mrb[17].mxu0 }
 0x44a   : > { %v956_v59 = vpop.f32.mrb[18].mxu0 }
 0x44b   : > { %v1331_v61 = vpack.c.bf16 %v960_v57, %v960_v57  ;;  %v1420_v62 = vpop.f32.mrb[19].mxu0 }
 0x44d   : > { %965 = vrot.lane.b32.xlu1 %v1331_v61, %s1791_s27 }
 0x450   : > { %v1080_v1 = vpop.f32.mrb[20].mxu0 }
 0x451   : > { %v1087_v2 = vmul.f32 %v1572_v63, %v1080_v1  ;;  %v1431_v3 = vpop.f32.mrb[21].mxu0 }
 0x452   : > { %v1083_v4 = vpop.f32.mrb[22].mxu0 }
 0x453   : > { %v1332_v5 = vpack.c.bf16 %v1087_v2, %v1087_v2  ;;  %v1432_v6 = vpop.f32.mrb[23].mxu0 }
 0x455   : > { %1092 = vrot.lane.b32.xlu1 %v1332_v5, %s1792_s16 }
 0x4b7   : > { %v839_v7 = vpop.permute.xlu0 %838 }
 0x4b8   : > { %842 = vst.msk [vmem:[#allocation4] sm:$0xf] %vm841_vm6, %v839_v7 }
 0x4bf   : > { %v966_v8 = vpop.permute.xlu1 %965 }
 0x4c0   : > { %969 = vst.msk [vmem:[#allocation4] sm:$0xf] %vm968_vm7, %v966_v8 }
 0x4c7   : > { %v1093_v0 = vpop.permute.xlu1 %1092 }
 0x4c8   : > { %1096 = vst.msk [vmem:[#allocation4] sm:$0xf] %vm1095_vm8, %v1093_v0 }
 0x4cf   : > { %v1097_v9 = vld [vmem:[#allocation4] sm:$0xf] }
 0x4d0   : > { %1438 = vmatmul.mubr.msk.bf16.vlgmr.msra.gmra.mrb[20].mxu1 %vm418_vm1, %v1097_v9 }
 0x5a3   : > { %v1158_v11 = vpop.f32.mrb[20].mxu1 }
 0x5a4   : > { %v1159_v12 = vadd.f32 %v1322_v10, %v1158_v11  ;;  %v1439_v13 = vpop.f32.mrb[21].mxu1 }
 0x5a5   : > { %v1161_v14 = vpop.f32.mrb[22].mxu1 }
 0x5a6   : > { %v1440_v15 = vpop.f32.mrb[23].mxu1  ;;  %1164 = vst.msk [vmem:[%s388_s20] sm:$0xff] %vm418_vm1, %v1159_v12 }
 0x5a7   : > { %1700 = shalt.err (!%p1697_p2)
}
 0x5a8   : > { %s1701_s21 = scalar_lea.hbm %s2149_s30, 128  ;;  %s1705_s27 = scalar_lea.hbm %s2206_s9, 256 }
 0x5a9   : > { %p1702_p3 = scmp.ne.s32.totalorder %s2149_s30, %s1701_s21  ;;  %p1706_p8 = scmp.lt.u32.totalorder %s2149_s30, %s2206_s9 }
 0x5aa   : > { %p1707_p12 = scmp.lt.u32.totalorder %s1705_s27, %s1701_s21  ;;  %p1709_p11 = scmp.lt.u32.totalorder %s1701_s21, %s2149_s30 }
 0x5ab   : > { %p1703_p6 = pnand %p1702_p3, %p2256_p0 }
 0x5ac   : > { %p1708_p13 = por %p1707_p12, %p1706_p8 }
 0x5ad   : > { %p1704_p10 = pneg %p1703_p6 }
 0x5ae   : > { %p1710_p5 = por %p1709_p11, %p1708_p13 }
 0x5b0   : > { %p1711_p7 = pnand %p1710_p5, %p1704_p10 }
 0x5b2   : > { %1714 = shalt.err (!%p1711_p7)
}
 0x5b3   : > { %1455 = dma.vmem_to_hbm [thread:$0]  (%p2256_p0), %s2151_s26, 128, %s2149_s30, %s1166_s12  }
 0x5b4 PF: > { %s2257_s0 = sld [smem:[#allocation18_spill]]  ;;  %s2258_s11 = sld [smem:[#allocation22_spill]] }
 0x5b5   : > { %p1480_p1 = scmp.ge.s32.totalorder %s1777_s14, 2 }
 0x5ba   : > { %s1192_s18 = sand.u32 1, %s2257_s0   ;;  %p2259_p4 = scmp.ne.s32.totalorder %s2258_s11, 0 }
 0x5bb   : > { %s1193_s19 = scalar_lea.sflag [#allocation7], %s1192_s18 }
 0x5bc   : > { %p1471_p9 = pnand %p1480_p1, %p2259_p4 }
 0x5be   : > { %1752 = dma.done.wait (!%p1471_p9), %s1193_s19, 128  }
 0x5bf   : > { %1754 = vsyncadd (!%p1471_p9), %s1193_s19, 4294967168  ;;  %s25_s14 = sadd.s32 1, %s1777_s14   ;;  %s2260_s20 = sld [smem:[#allocation19_spill]] }
 0x5c0   : > { %p22_p2 = scmp.ge.s32.totalorder %s25_s14, 4   ;;  %s2261_s11 = sld [smem:[#allocation23_spill]] }
 0x5c1   : > { %s2262_s12 = sld [smem:[#allocation20_spill]]  ;;  %s2263_s13 = sld [smem:[#allocation21_spill]] }
 0x5c2   : > { %s2264_s30 = smov %s1761_s10  ;;  %24 = sbr.rel (!%p22_p2) target bundleno = 10 (0xa), region = 111 }
 0x5c5   : > { %s2265_s10 = smov %s2260_s20 }
 0x5c9   :  { %1198 = vsyncpa [#allocation6], 1 }
 0x5ca   :  { %1200 = vsyncpa [#allocation6 + $0x1], 1 }
 0x5cb   :  { %1201 = vsyncpa [#allocation9], 1 }
 0x5cc   :  { %1202 = vsyncpa [#allocation12], 1 }
 0x5cd   :  { %1203 = vsyncpa [#allocation7], 1 }
 0x5ce   :  { %1205 = vsyncpa [#allocation7 + $0x1], 1 }

</bundles_post_ra>
